<compile_context>
chip_gen: v7x
topology: tpu7x:2x2x1
jax: 0.10.0
libtpu: 0.0.40
codegen_flags: <defaults>
</compile_context>

<pallas_src>
import functools

import jax
import jax.numpy as jnp
from jax import lax
from jax.experimental import pallas as pl
from jax.experimental.pallas import tpu as pltpu

_LANES = 128
_CHUNK_ROWS = 256                      # 256 x 128 f32 = 128 KiB per sub-chunk
_TARGET_TILE_BYTES = 2 * 1024 * 1024   # per operand per pipeline buffer


def _round_up(x, m):
    return ((x + m - 1) // m) * m


def _sublane_multiple(dtype):
    # Packed min-tile second-to-last dim: 8 (4-byte), 16 (2-byte), 32 (1-byte).
    return max(8, 32 // jnp.dtype(dtype).itemsize)


def _num_partials_for_device():
    # 2 TensorCores per chip only on v7x; v5e/v6e are single-TC.
    # TODO(synk): on v7x verify with xprof that the "parallel" axis engages both TCs;
    # if not, switch the leading axis to pltpu.CORE_PARALLEL / pl.core_map.
    try:
        dev = jax.devices()[0]
        if dev.platform != "tpu":
            return 1
        kind = dev.device_kind.lower()
    except Exception:
        return 1
    return 2 if ("v7" in kind or "7x" in kind) else 1


def _mse_sum_kernel(a_ref, b_ref, out_ref, *, steps, tile_rows, chunk_rows,
                    valid_rows, num_blocks, needs_row_mask, has_oob_blocks):
    """Accumulates sum((a-b)^2) of this partial's tiles into an (8,128) output block."""
    p = pl.program_id(0)
    i = pl.program_id(1)
    blk = p * steps + i

    @pl.when(i == 0)
    def _init():
        out_ref[...] = jnp.zeros_like(out_ref)

    def _accumulate(apply_mask):
        def block_partial(a_f32, b_f32, base_row):
            d = a_f32 - b_f32
            sq = d * d
            if apply_mask:
                row_ids = lax.broadcasted_iota(jnp.int32, sq.shape, 0) + base_row
                sq = jnp.where(row_ids < valid_rows, sq, 0.0)
            # Sublane-group partial reduce: pure VPU adds; cross-lane reduce is
            # deferred to the (tiny) wrapper-side sum.
            return sq.reshape(sq.shape[0] // 8, 8, _LANES).sum(axis=0)

        base = blk * tile_rows
        if chunk_rows == tile_rows:
            part = block_partial(a_ref[...].astype(jnp.float32),
                                 b_ref[...].astype(jnp.float32), base)
        else:
            def chunk_body(c, acc):
                off = pl.multiple_of(c * chunk_rows, chunk_rows)
                a = a_ref[pl.ds(off, chunk_rows), :].astype(jnp.float32)
                b = b_ref[pl.ds(off, chunk_rows), :].astype(jnp.float32)
                return acc + block_partial(a, b, base + off)

            part = lax.fori_loop(0, tile_rows // chunk_rows, chunk_body,
                                 jnp.zeros((8, _LANES), jnp.float32), unroll=True)

        out_ref[...] += part

    last_blk = num_blocks - 1
    if needs_row_mask:
        # Mask only on the last valid block; unmasked fast path everywhere else.
        if has_oob_blocks:
            pl.when(blk < last_blk)(lambda: _accumulate(False))
        else:
            pl.when(blk != last_blk)(lambda: _accumulate(False))
        pl.when(blk == last_blk)(lambda: _accumulate(True))
    else:
        if has_oob_blocks:
            pl.when(blk < num_blocks)(lambda: _accumulate(False))
        else:
            _accumulate(False)


def regularization_loss(sr, sr_tto):
    """MSELoss(sr, sr_tto) with reduction='mean', computed with a Pallas TPU kernel."""
    assert sr.shape == sr_tto.shape, "sr and sr_tto must have identical shapes"
    if sr.dtype != sr_tto.dtype:
        ct = jnp.promote_types(sr.dtype, sr_tto.dtype)
        sr, sr_tto = sr.astype(ct), sr_tto.astype(ct)

    n = sr.size
    a_flat = jnp.ravel(sr)
    b_flat = jnp.ravel(sr_tto)

    rows = n // _LANES
    rem = n - rows * _LANES

    # Ragged <128-element tail: tiny JAX epilogue (no full-array pad/copy in HBM).
    tail_sum = jnp.float32(0.0)
    if rem:
        at = a_flat[rows * _LANES:].astype(jnp.float32)
        bt = b_flat[rows * _LANES:].astype(jnp.float32)
        tail_sum = jnp.sum((at - bt) ** 2)

    if rows == 0:
        # Fewer than 128 elements total: the epilogue already covered everything.
        return (tail_sum / jnp.float32(n)).astype(jnp.float32)

    a_main = a_flat if rem == 0 else a_flat[:rows * _LANES]
    b_main = b_flat if rem == 0 else b_flat[:rows * _LANES]
    a2d = a_main.reshape(rows, _LANES)
    b2d = b_main.reshape(rows, _LANES)

    itemsize = jnp.dtype(a2d.dtype).itemsize
    sub_mult = _sublane_multiple(a2d.dtype)
    # ~2 MiB per operand per pipeline buffer (4096 rows f32 / 8192 rows bf16);
    # always a multiple of _CHUNK_ROWS and of the packed sublane multiple.
    max_tile_rows = max(_TARGET_TILE_BYTES // (_LANES * itemsize), _CHUNK_ROWS)

    tile_rows = min(max_tile_rows, _round_up(rows, sub_mult))
    num_blocks = pl.cdiv(rows, tile_rows)
    needs_row_mask = (rows % tile_rows) != 0
    chunk_rows = _CHUNK_ROWS if tile_rows % _CHUNK_ROWS == 0 else tile_rows

    num_partials = _num_partials_for_device() if num_blocks >= 2 else 1
    steps = pl.cdiv(num_blocks, num_partials)
    has_oob_blocks = num_partials * steps > num_blocks

    if has_oob_blocks:
        def in_map(p_, i_):
            # Clamp fully-out-of-range logical blocks onto the last valid block; the
            # kernel skips their accumulation via pl.when, so nothing is double counted.
            return (jnp.minimum(p_ * steps + i_, num_blocks - 1), 0)
    else:
        def in_map(p_, i_):
            return (p_ * steps + i_, 0)

    kernel = functools.partial(
        _mse_sum_kernel, steps=steps, tile_rows=tile_rows, chunk_rows=chunk_rows,
        valid_rows=rows, num_blocks=num_blocks, needs_row_mask=needs_row_mask,
        has_oob_blocks=has_oob_blocks)

    partials = pl.pallas_call(
        kernel,
        out_shape=jax.ShapeDtypeStruct((8 * num_partials, _LANES), jnp.float32),
        grid_spec=pltpu.PrefetchScalarGridSpec(
            num_scalar_prefetch=0,
            grid=(num_partials, steps),
            in_specs=[
                pl.BlockSpec((tile_rows, _LANES), in_map),
                pl.BlockSpec((tile_rows, _LANES), in_map),
            ],
            out_specs=pl.BlockSpec((8, _LANES), lambda p_, i_: (p_, 0)),
        ),
        compiler_params=pltpu.CompilerParams(
            dimension_semantics=("parallel", "arbitrary"),
            vmem_limit_bytes=32 * 1024 * 1024,
        ),
        cost_estimate=pl.CostEstimate(
            flops=3 * int(rows) * _LANES,
            transcendentals=0,
            bytes_accessed=2 * int(rows) * _LANES * itemsize
                           + 8 * num_partials * _LANES * 4,
        ),
    )(a2d, b2d)

    # Sum the per-partial (8,128) accumulators (<=2048 floats) plus the tail, then mean.
    total = jnp.sum(partials) + tail_sum
    return (total / jnp.float32(n)).astype(jnp.float32)


if __name__ == "__main__":
    key = jax.random.PRNGKey(0)
    k1, k2, k3, k4, k5, k6 = jax.random.split(key, 6)

    # Primary small NCHW example (super-resolution output pair).
    sr = jax.random.normal(k1, (2, 4, 16, 16), dtype=jnp.float32)
    sr_tto = jax.random.normal(k2, (2, 4, 16, 16), dtype=jnp.float32)
    loss = regularization_loss(sr, sr_tto)
    jax.block_until_ready(loss)
    ref = jnp.mean((sr - sr_tto) ** 2)
    assert jnp.allclose(loss, ref, rtol=1e-5, atol=1e-6), (loss, ref)

    # Odd-sized shape: exercises the ragged-tail epilogue + masked last block.
    x1 = jax.random.normal(k3, (3, 5, 37, 29), dtype=jnp.float32)
    x2 = jax.random.normal(k4, (3, 5, 37, 29), dtype=jnp.float32)
    loss2 = regularization_loss(x1, x2)
    jax.block_until_ready(loss2)
    ref2 = jnp.mean((x1 - x2) ** 2)
    assert jnp.allclose(loss2, ref2, rtol=1e-5, atol=1e-6), (loss2, ref2)

    # bf16 inputs stay bf16 in HBM and are upcast in-kernel (halves read traffic);
    # exercises the chunked fori_loop accumulation path.
    y1 = jax.random.normal(k5, (4, 8, 64, 64), dtype=jnp.bfloat16)
    y2 = jax.random.normal(k6, (4, 8, 64, 64), dtype=jnp.bfloat16)
    loss3 = regularization_loss(y1, y2)
    jax.block_until_ready(loss3)
    ref3 = jnp.mean((y1.astype(jnp.float32) - y2.astype(jnp.float32)) ** 2)
    assert jnp.allclose(loss3, ref3, rtol=1e-4, atol=1e-6), (loss3, ref3)

    print("KERNEL_OK")
</pallas_src>

<mosaic_0001>
module attributes {stable_mosaic.version = 11 : i64} {
  func.func @_mse_sum_kernel(%arg0: i32, %arg1: i32, %arg2: memref<16x128xf32, #tpu.memory_space<vmem>>, %arg3: memref<16x128xf32, #tpu.memory_space<vmem>>, %arg4: memref<8x128xf32, #tpu.memory_space<vmem>>) attributes {dimension_semantics = [#tpu.dimension_semantics<parallel>, #tpu.dimension_semantics<arbitrary>], iteration_bounds = array<i64: 1, 1>, scalar_prefetch = 0 : i64, scratch_operands = 0 : i64, tpu.core_type = #tpu.core_type<tc>, window_params = [{transform_indices = @transform_0, window_bounds = array<i64: 16, 128>}, {transform_indices = @transform_1, window_bounds = array<i64: 16, 128>}, {transform_indices = @transform_2, window_bounds = array<i64: 8, 128>}]} {
    %c0_i32 = arith.constant 0 : i32
    %0 = arith.cmpi eq, %arg1, %c0_i32 : i32
    %1 = arith.extui %0 : i1 to i32
    %c0_i32_0 = arith.constant 0 : i32
    %2 = arith.cmpi ne, %1, %c0_i32_0 : i32
    scf.if %2 {
      %cst_8 = arith.constant 0.000000e+00 : f32
      %12 = vector.broadcast %cst_8 : f32 to vector<8x128xf32>
      %c0_9 = arith.constant 0 : index
      %c0_10 = arith.constant 0 : index
      %13 = vector.load %arg4[%c0_9, %c0_10] : memref<8x128xf32, #tpu.memory_space<vmem>>, vector<8x128xf32>
      tpu.vector_store %arg4[%c0_9, %c0_10], %12 {strides = array<i32>} : memref<8x128xf32, #tpu.memory_space<vmem>>, vector<8x128xf32>,
    } else {
    }
    %c0 = arith.constant 0 : index
    %c0_1 = arith.constant 0 : index
    %3 = vector.load %arg2[%c0, %c0_1] : memref<16x128xf32, #tpu.memory_space<vmem>>, vector<16x128xf32>
    %c0_2 = arith.constant 0 : index
    %c0_3 = arith.constant 0 : index
    %4 = vector.load %arg3[%c0_2, %c0_3] : memref<16x128xf32, #tpu.memory_space<vmem>>, vector<16x128xf32>
    %5 = arith.subf %3, %4 : vector<16x128xf32>
    %6 = arith.mulf %5, %5 : vector<16x128xf32>
    %7 = vector.shape_cast %6 : vector<16x128xf32> to vector<2x8x128xf32>
    %cst = arith.constant dense<0.000000e+00> : vector<8x128xf32>
    %8 = vector.multi_reduction <add>, %7, %cst [0] : vector<2x8x128xf32> to vector<8x128xf32>
    %c0_4 = arith.constant 0 : index
    %c0_5 = arith.constant 0 : index
    %9 = vector.load %arg4[%c0_4, %c0_5] : memref<8x128xf32, #tpu.memory_space<vmem>>, vector<8x128xf32>
    %10 = arith.addf %9, %8 : vector<8x128xf32>
    %c0_6 = arith.constant 0 : index
    %c0_7 = arith.constant 0 : index
    %11 = vector.load %arg4[%c0_6, %c0_7] : memref<8x128xf32, #tpu.memory_space<vmem>>, vector<8x128xf32>
    tpu.vector_store %arg4[%c0_6, %c0_7], %10 {strides = array<i32>} : memref<8x128xf32, #tpu.memory_space<vmem>>, vector<8x128xf32>,
    return
  }
  func.func @transform_0(%arg0: i32, %arg1: i32) -> (i32, i32) {
    %c1_i32 = arith.constant 1 : i32
    %0 = arith.muli %arg0, %c1_i32 : i32
    %1 = arith.addi %0, %arg1 : i32
    %c0_i32 = arith.constant 0 : i32
    %c0_i32_0 = arith.constant 0 : i32
    return %1, %c0_i32 : i32, i32
  }
  func.func @transform_1(%arg0: i32, %arg1: i32) -> (i32, i32) {
    %c1_i32 = arith.constant 1 : i32
    %0 = arith.muli %arg0, %c1_i32 : i32
    %1 = arith.addi %0, %arg1 : i32
    %c0_i32 = arith.constant 0 : i32
    %c0_i32_0 = arith.constant 0 : i32
    return %1, %c0_i32 : i32, i32
  }
  func.func @transform_2(%arg0: i32, %arg1: i32) -> (i32, i32) {
    %c0_i32 = arith.constant 0 : i32
    %c0_i32_0 = arith.constant 0 : i32
    return %arg0, %c0_i32 : i32, i32
  }
}

</mosaic_0001>

<bundles_post_ra>
// kernel: tpu_custom_call.1
= control target key start
LH: loop header
LB: loop body
LE: loop exit
PB: predicated region body
PF: predicated region fallthrough
CT: control target
= control target key end

     0   :  { %7 = vsyncpa [#allocation3], 0  ;;  %s219_s0 = inlined_call_operand.hbm [shape: f32[16,128], index: 0, kind: input, shape index: {}]   ;;  %s220_s1 = inlined_call_operand.hbm [shape: f32[16,128], index: 1, kind: input, shape index: {}]   ;;  %s221_s2 = inlined_call_operand.hbm [shape: f32[8,128], index: 2, kind: output, shape index: {}]  }
   0x1   :  { %8 = vsyncpa [#allocation6], 0 }
   0x2   :  { %9 = vsyncpa [#allocation4], 0  ;;  %s163_s9 = smov [#allocation2]   ;;  %s91_s13 = scalar_lea.hbm %s219_s0, 256 }
   0x3   :  { %s19_s10 = sshll.u32 %s163_s9, 4  ;;  %p92_p0 = scmp.ne.s32.totalorder %s219_s0, %s91_s13  ;;  %s20_s10 = int_to_ptr.vmem [resolvable:$true] %s19_s10 }
   0x4   :  { %p95_p1 = scmp.lt.u32.totalorder %s91_s13, %s219_s0 }
   0x6   :  { %p97_p2 = pnand %p95_p1, %p92_p0 }
   0x8   :  { %100 = shalt.err (!%p97_p2)
}
   0x9   :  { %s101_s18 = scalar_lea.vmem %s20_s10, 256  ;;  %p106_p4 = scmp.lt.s32.totalorder %s20_s10, %s20_s10 }
   0xa   :  { %p102_p3 = scmp.ne.s32.totalorder %s20_s10, %s101_s18  ;;  %p107_p5 = scmp.lt.s32.totalorder %s101_s18, %s101_s18 }
   0xc   :  { %p108_p6 = por %p107_p5, %p106_p4 }
   0xe   :  { %p109_p7 = pnand %p108_p6, %p102_p3 }
  0x10   :  { %112 = shalt.err (!%p109_p7)
}
  0x11   :  { %s164_s19 = smov 128   ;;  %s165_s20 = smov 8  }
  0x12   :  { %25 = dma.hbm_to_vmem [thread:$0]  %s219_s0, 256, %s20_s10, [#allocation3], %s164_s19, %s164_s19, %s165_s20  }
  0x13   :  { %s166_s23 = smov [#allocation5]   ;;  %s113_s27 = scalar_lea.hbm %s220_s1, 256 }
  0x14   :  { %s35_s24 = sshll.u32 %s166_s23, 4  ;;  %p114_p8 = scmp.ne.s32.totalorder %s220_s1, %s113_s27  ;;  %s36_s24 = int_to_ptr.vmem [resolvable:$true] %s35_s24 }
  0x15   :  { %p117_p9 = scmp.lt.u32.totalorder %s113_s27, %s220_s1 }
  0x17   :  { %p119_p10 = pnand %p117_p9, %p114_p8 }
  0x19   :  { %122 = shalt.err (!%p119_p10)
}
  0x1a   :  { %s123_s4 = scalar_lea.vmem %s36_s24, 256  ;;  %p128_p12 = scmp.lt.s32.totalorder %s36_s24, %s36_s24 }
  0x1b   :  { %p124_p11 = scmp.ne.s32.totalorder %s36_s24, %s123_s4  ;;  %p129_p13 = scmp.lt.s32.totalorder %s123_s4, %s123_s4 }
  0x1d   :  { %p130_p0 = por %p129_p13, %p128_p12 }
  0x1f   :  { %p131_p1 = pnand %p130_p0, %p124_p11 }
  0x21   :  { %134 = shalt.err (!%p131_p1)
}
  0x22   :  { %41 = dma.hbm_to_vmem [thread:$0]  %s220_s1, 256, %s36_s24, [#allocation6], %s164_s19, %s164_s19, %s165_s20  }
  0x23   :  { %157 = dma.done.wait [#allocation3], 256  }
  0x24   :  { %158 = vsyncadd [#allocation3], 4294967040 }
  0x25   :  { %159 = dma.done.wait [#allocation6], 256  }
  0x26   :  { %160 = vsyncadd [#allocation6], 4294967040  ;;  %v57_v0 = vld [vmem:[#allocation2] sm:$0xff]  ;;  %v58_v1 = vld [vmem:[#allocation2 + $0x8] sm:$0xff]  ;;  %s167_s6 = smov [#allocation7]  }
  0x27   :  { %v59_v2 = vld [vmem:[#allocation5] sm:$0xff]  ;;  %v60_v3 = vld [vmem:[#allocation5 + $0x8] sm:$0xff]  ;;  %s75_s7 = sshll.u32 %s167_s6, 4  ;;  %s76_s7 = int_to_ptr.vmem [resolvable:$true] %s75_s7 }
  0x28   :  { %v61_v4 = vsub.f32 %v57_v0, %v59_v2  ;;  %v62_v5 = vsub.f32 %v58_v1, %v60_v3  ;;  %s135_s8 = scalar_lea.vmem %s76_s7, 128  ;;  %p140_p3 = scmp.lt.s32.totalorder %s76_s7, %s76_s7 }
  0x29   :  { %p136_p2 = scmp.ne.s32.totalorder %s76_s7, %s135_s8  ;;  %p141_p4 = scmp.lt.s32.totalorder %s135_s8, %s135_s8 }
  0x2a   :  { %v63_v6 = vmul.f32 %v61_v4, %v61_v4  ;;  %v64_v7 = vmul.f32 %v62_v5, %v62_v5 }
  0x2b   :  { %p142_p5 = por %p141_p4, %p140_p3 }
  0x2c   :  { %v65_v8 = vadd.f32 %v64_v7, %v63_v6 }
  0x2d   :  { %p143_p6 = pnand %p142_p5, %p136_p2 }
  0x2e   :  { %68 = vst [vmem:[#allocation7] sm:$0xff] %v65_v8 }
  0x2f   :  { %146 = shalt.err (!%p143_p6)
}
  0x30   :  { %s147_s10 = scalar_lea.hbm %s221_s2, 128 }
  0x31   :  { %p148_p7 = scmp.ne.s32.totalorder %s221_s2, %s147_s10  ;;  %p151_p8 = scmp.lt.u32.totalorder %s147_s10, %s221_s2 }
  0x33   :  { %p153_p9 = pnand %p151_p8, %p148_p7 }
  0x35   :  { %156 = shalt.err (!%p153_p9)
}
  0x36   :  { %78 = dma.vmem_to_hbm [thread:$0]  %s76_s7, 128, %s221_s2, [#allocation4]  }
  0x37   :  { %161 = dma.done.wait [#allocation4], 128  }
  0x38   :  { %162 = vsyncadd [#allocation4], 4294967168 }
  0x39   :  { %82 = vsyncpa [#allocation3], 1 }
  0x3a   :  { %83 = vsyncpa [#allocation6], 1 }
  0x3b   :  { %84 = vsyncpa [#allocation4], 1 }

</bundles_post_ra>
